<compile_context>
chip_gen: v6e
topology: v6e:2x2x1
jax: 0.10.0
libtpu: 0.0.40
codegen_flags: <defaults>
</compile_context>

<pallas_src>
import functools

import jax
import jax.numpy as jnp
from jax.experimental import pallas as pl
from jax.experimental.pallas import tpu as pltpu


LN_EPS = 1e-5   # torch.nn.LayerNorm default
LANE = 128      # TPU lane width


def _round_up(n, m):
    return ((n + m - 1) // m) * m


def _mlp_fused_kernel(*refs, layer_cfg):
    """Fused MLP body.

    refs = (x_ref, <per-layer params...>, o_ref)
    Per layer the params are (w, b) and, if that layer has LayerNorm,
    additionally (gamma, beta).  `layer_cfg` is a static tuple of
    (has_layer_norm, has_relu, real_dout, padded_dout) per layer.
    Padded lanes of every parameter are zero, so padded activation lanes stay
    exactly zero through matmul / LN / ReLU (the LN variance is masked to the
    real width).
    """
    x_ref = refs[0]
    o_ref = refs[-1]
    pr = refs[1:-1]

    h = x_ref[...]            # native dtype; no forced up-cast
    idx = 0
    for has_ln, has_relu, dout, dout_pad in layer_cfg:
        w_ref, b_ref = pr[idx], pr[idx + 1]
        idx += 2
        # MXU matmul: operands in the weights' dtype, f32 accumulation.
        y = jnp.dot(h.astype(w_ref.dtype), w_ref[...],
                    preferred_element_type=jnp.float32)
        y = y + b_ref[...].astype(jnp.float32)

        if has_ln:
            g_ref, beta_ref = pr[idx], pr[idx + 1]
            idx += 2
            inv_n = 1.0 / float(dout)           # static python scalar
            # Padded lanes of y are exactly 0 (zero weight cols + zero bias),
            # so the plain sum is already the sum over the real lanes.
            mean = jnp.sum(y, axis=-1, keepdims=True) * inv_n
            centered = y - mean
            if dout_pad != dout:
                lane_idx = jax.lax.broadcasted_iota(jnp.int32, y.shape, 1)
                centered = jnp.where(lane_idx < dout, centered, 0.0)
            var = jnp.sum(centered * centered, axis=-1, keepdims=True) * inv_n
            inv = jax.lax.rsqrt(var + LN_EPS)
            # Padded gamma/beta are 0, so padded lanes remain exactly 0.
            y = (centered * inv) * g_ref[...].astype(jnp.float32) \
                + beta_ref[...].astype(jnp.float32)

        if has_relu:
            y = jnp.maximum(y, 0.0)

        h = y                 # stays in VMEM/vregs; never round-trips HBM

    o_ref[...] = h.astype(o_ref.dtype)


def _pick_batch_tile(B, batch_tile):
    """Largest batch tile <= batch_tile.

    Prefers a single grid step (TB=B) when the whole batch fits; otherwise the
    largest divisor of B that is a multiple of 128 (one full MXU row pass),
    then multiples of 8, else B.
    """
    if B <= batch_tile:
        return B
    t = (batch_tile // 128) * 128
    while t >= 128:
        if B % t == 0:
            return t
        t -= 128
    t = (batch_tile // 8) * 8
    while t >= 8:
        if B % t == 0:
            return t
        t -= 8
    return B


def mlp_forward(x, params, *, use_layer_norm=True, batch_tile=256,
                pad_features=True):
    """Fused MLP forward (eval mode: dropout is identity).

    x: [B, Din0].  params: list of (w [Din, Dout], b [1, Dout],
    gamma [1, Dout], beta [1, Dout]); gamma/beta are ignored for the last
    layer (no LayerNorm) and when use_layer_norm=False.  Weights may be bf16;
    accumulation is always f32.
    """
    B, din0 = x.shape
    n_layers = len(params)
    dout_last = params[-1][0].shape[1]

    TB = _pick_batch_tile(B, batch_tile)
    grid = (B // TB,) if B % TB == 0 else (1,)
    if grid == (1,):
        TB = B

    # --- lane-pad the feature dims (zeros) so stores are unmasked, vregs full.
    din0_pad = _round_up(din0, LANE) if pad_features else din0
    x_in = x if din0_pad == din0 else jnp.pad(x, ((0, 0), (0, din0_pad - din0)))

    inputs = [x_in]
    in_specs = [pl.BlockSpec((TB, din0_pad), lambda i: (i, 0))]
    layer_cfg = []
    flops = 0
    n_ln = 0
    param_bytes = 0
    max_width_pad = din0_pad

    for li, (w, b, gamma, beta) in enumerate(params):
        is_last = li == n_layers - 1
        din, dout = w.shape
        din_pad = _round_up(din, LANE) if pad_features else din
        dout_pad = _round_up(dout, LANE) if pad_features else dout
        max_width_pad = max(max_width_pad, dout_pad)
        has_ln = bool(use_layer_norm and not is_last)
        has_relu = not is_last
        layer_cfg.append((has_ln, has_relu, dout, dout_pad))

        w_p = w if (din_pad == din and dout_pad == dout) else jnp.pad(
            w, ((0, din_pad - din), (0, dout_pad - dout)))
        b_p = b if dout_pad == dout else jnp.pad(b, ((0, 0), (0, dout_pad - dout)))
        inputs += [w_p, b_p]
        in_specs += [
            pl.BlockSpec((din_pad, dout_pad), lambda i: (0, 0)),   # resident
            pl.BlockSpec((1, dout_pad), lambda i: (0, 0)),         # resident
        ]
        param_bytes += din_pad * dout_pad * w_p.dtype.itemsize
        param_bytes += dout_pad * b_p.dtype.itemsize

        if has_ln:
            g_p = gamma if dout_pad == dout else jnp.pad(
                gamma, ((0, 0), (0, dout_pad - dout)))
            beta_p = beta if dout_pad == dout else jnp.pad(
                beta, ((0, 0), (0, dout_pad - dout)))
            inputs += [g_p, beta_p]
            in_specs += [
                pl.BlockSpec((1, dout_pad), lambda i: (0, 0)),
                pl.BlockSpec((1, dout_pad), lambda i: (0, 0)),
            ]
            param_bytes += 2 * dout_pad * g_p.dtype.itemsize
            n_ln += 1

        flops += 2 * B * din_pad * dout_pad   # actual (padded) MXU work

    dout_last_pad = layer_cfg[-1][3]
    kernel = functools.partial(_mlp_fused_kernel, layer_cfg=tuple(layer_cfg))

    # --- VMEM budget: double-buffered params + in/out tiles + intermediates.
    in_tile_bytes = TB * din0_pad * x_in.dtype.itemsize
    out_tile_bytes = TB * dout_last_pad * 4
    needed = 2 * (param_bytes + in_tile_bytes + out_tile_bytes) \
        + 4 * TB * max_width_pad * 4
    vmem_limit = int(min(64 * 1024 * 1024, max(32 * 1024 * 1024, 2 * needed)))
    # TODO(synk): if resident params ever exceed this budget (large hidden
    # sizes on v7x's 64 MiB VMEM), fall back to tiling weights along dout
    # (extra grid axis of 128/256-lane blocks) instead of full residency.

    # Whole-batch HBM traffic + one read of the (padded) resident params;
    # one rsqrt per (row x LayerNorm layer).
    cost = pl.CostEstimate(
        flops=flops,
        transcendentals=B * n_ln,
        bytes_accessed=(B * din0_pad * x_in.dtype.itemsize
                        + B * dout_last_pad * 4 + param_bytes),
    )

    out_pad = pl.pallas_call(
        kernel,
        out_shape=jax.ShapeDtypeStruct((B, dout_last_pad), jnp.float32),
        grid=grid,
        in_specs=in_specs,
        out_specs=pl.BlockSpec((TB, dout_last_pad), lambda i: (i, 0)),
        compiler_params=pltpu.CompilerParams(
            dimension_semantics=("parallel",),
            vmem_limit_bytes=vmem_limit),
        cost_estimate=cost,
    )(*inputs)

    if dout_last_pad != dout_last:
        out_pad = out_pad[:, :dout_last]
    return out_pad


def init_mlp_params(key, sizes, init_scaling=0.1, param_dtype=jnp.float32):
    """Deterministic synthetic init mirroring the module's parameter shapes.

    Per layer i: weight [sizes[i], sizes[i+1]] (stored transposed vs torch),
    bias [1, sizes[i+1]], and LayerNorm gamma=1, beta=0 (torch defaults).
    Use param_dtype=jnp.bfloat16 for the native fast MXU path on v6e/v7x.
    """
    params = []
    n_layers = len(sizes) - 1
    for i in range(n_layers):
        key, kw, kb = jax.random.split(key, 3)
        din, dout = sizes[i], sizes[i + 1]
        lim = 1.0 / jnp.sqrt(jnp.float32(din))   # nn.Linear init, scaled
        w = (jax.random.uniform(kw, (din, dout), jnp.float32, -lim, lim)
             * init_scaling).astype(param_dtype)
        b = (jax.random.uniform(kb, (1, dout), jnp.float32, -lim, lim)
             * init_scaling).astype(param_dtype)
        gamma = jnp.ones((1, dout), param_dtype)
        beta = jnp.zeros((1, dout), param_dtype)
        params.append((w, b, gamma, beta))
    return params


def _mlp_reference(x, params, *, use_layer_norm=True):
    """Pure-JAX reference for correctness checking."""
    n_layers = len(params)
    h = x.astype(jnp.float32)
    for i, (w, b, gamma, beta) in enumerate(params):
        is_last = i == n_layers - 1
        y = h @ w.astype(jnp.float32) + b.astype(jnp.float32)
        if use_layer_norm and not is_last:
            mean = jnp.mean(y, axis=-1, keepdims=True)
            c = y - mean
            var = jnp.mean(c * c, axis=-1, keepdims=True)
            y = (c * jax.lax.rsqrt(var + LN_EPS) * gamma.astype(jnp.float32)
                 + beta.astype(jnp.float32))
        if not is_last:
            y = jnp.maximum(y, 0.0)
        h = y
    return h


# TODO(synk): training-mode dropout (stateful PRNG masking) not implemented;
# eval semantics only.


if __name__ == "__main__":
    key = jax.random.PRNGKey(0)
    sizes = [32, 64, 64, 16]   # MLP([32, 64, 64, 16])

    kx, kp = jax.random.split(key)
    params = init_mlp_params(kp, sizes, init_scaling=0.1)

    # Demo batch: one grid step (TB = B = 32), all params VMEM-resident.
    x = jax.random.normal(kx, (32, sizes[0]), jnp.float32)
    out = jax.block_until_ready(mlp_forward(x, params))
    ref = _mlp_reference(x, params)
    assert out.shape == ref.shape == (32, sizes[-1])
    assert jnp.allclose(out, ref, atol=1e-5, rtol=1e-5), \
        f"max abs err {jnp.max(jnp.abs(out - ref))}"

    # Larger batch exercising a multi-step 'parallel' grid (2 tiles of 128).
    x2 = jax.random.normal(kx, (256, sizes[0]), jnp.float32)
    out2 = jax.block_until_ready(mlp_forward(x2, params, batch_tile=128))
    ref2 = _mlp_reference(x2, params)
    assert out2.shape == ref2.shape == (256, sizes[-1])
    assert jnp.allclose(out2, ref2, atol=1e-5, rtol=1e-5), \
        f"max abs err {jnp.max(jnp.abs(out2 - ref2))}"

    print("KERNEL_OK")
</pallas_src>

<mosaic_0001>
module attributes {stable_mosaic.version = 11 : i64} {
  func.func @_mlp_fused_kernel(%arg0: i32, %arg1: memref<32x128xf32, #tpu.memory_space<vmem>>, %arg2: memref<128x128xf32, #tpu.memory_space<vmem>>, %arg3: memref<1x128xf32, #tpu.memory_space<vmem>>, %arg4: memref<1x128xf32, #tpu.memory_space<vmem>>, %arg5: memref<1x128xf32, #tpu.memory_space<vmem>>, %arg6: memref<128x128xf32, #tpu.memory_space<vmem>>, %arg7: memref<1x128xf32, #tpu.memory_space<vmem>>, %arg8: memref<1x128xf32, #tpu.memory_space<vmem>>, %arg9: memref<1x128xf32, #tpu.memory_space<vmem>>, %arg10: memref<128x128xf32, #tpu.memory_space<vmem>>, %arg11: memref<1x128xf32, #tpu.memory_space<vmem>>, %arg12: memref<32x128xf32, #tpu.memory_space<vmem>>) attributes {dimension_semantics = [#tpu.dimension_semantics<parallel>], iteration_bounds = array<i64: 1>, scalar_prefetch = 0 : i64, scratch_operands = 0 : i64, tpu.core_type = #tpu.core_type<tc>, window_params = [{transform_indices = @transform_0, window_bounds = array<i64: 32, 128>}, {pipeline_mode = #tpu.pipeline_mode<synchronous>, transform_indices = @transform_1, window_bounds = array<i64: 128, 128>}, {pipeline_mode = #tpu.pipeline_mode<synchronous>, transform_indices = @transform_2, window_bounds = array<i64: 1, 128>}, {pipeline_mode = #tpu.pipeline_mode<synchronous>, transform_indices = @transform_3, window_bounds = array<i64: 1, 128>}, {pipeline_mode = #tpu.pipeline_mode<synchronous>, transform_indices = @transform_4, window_bounds = array<i64: 1, 128>}, {pipeline_mode = #tpu.pipeline_mode<synchronous>, transform_indices = @transform_5, window_bounds = array<i64: 128, 128>}, {pipeline_mode = #tpu.pipeline_mode<synchronous>, transform_indices = @transform_6, window_bounds = array<i64: 1, 128>}, {pipeline_mode = #tpu.pipeline_mode<synchronous>, transform_indices = @transform_7, window_bounds = array<i64: 1, 128>}, {pipeline_mode = #tpu.pipeline_mode<synchronous>, transform_indices = @transform_8, window_bounds = array<i64: 1, 128>}, {pipeline_mode = #tpu.pipeline_mode<synchronous>, transform_indices = @transform_9, window_bounds = array<i64: 128, 128>}, {pipeline_mode = #tpu.pipeline_mode<synchronous>, transform_indices = @transform_10, window_bounds = array<i64: 1, 128>}, {transform_indices = @transform_11, window_bounds = array<i64: 32, 128>}]} {
    %c0 = arith.constant 0 : index
    %c0_0 = arith.constant 0 : index
    %0 = vector.load %arg1[%c0, %c0_0] : memref<32x128xf32, #tpu.memory_space<vmem>>, vector<32x128xf32>
    %c0_1 = arith.constant 0 : index
    %c0_2 = arith.constant 0 : index
    %1 = vector.load %arg2[%c0_1, %c0_2] : memref<128x128xf32, #tpu.memory_space<vmem>>, vector<128x128xf32>
    %cst = arith.constant dense<0.000000e+00> : vector<32x128xf32>
    %2 = tpu.matmul %0, %1, %cst {dimension_numbers = #tpu.dot_dimension_numbers<[1], [0], [0], [1], [0, 0, 1, 1], [], []>} : vector<32x128xf32>, vector<128x128xf32>, vector<32x128xf32> -> vector<32x128xf32>
    %c0_3 = arith.constant 0 : index
    %c0_4 = arith.constant 0 : index
    %3 = vector.load %arg3[%c0_3, %c0_4] : memref<1x128xf32, #tpu.memory_space<vmem>>, vector<1x128xf32>
    %4 = vector.broadcast %3 : vector<1x128xf32> to vector<32x128xf32>
    %5 = arith.addf %2, %4 : vector<32x128xf32>
    %cst_5 = arith.constant dense<0.000000e+00> : vector<32xf32>
    %6 = vector.multi_reduction <add>, %5, %cst_5 [1] : vector<32x128xf32> to vector<32xf32>
    %7 = vector.shape_cast %6 : vector<32xf32> to vector<32x1xf32>
    %cst_6 = arith.constant 1.562500e-02 : f32
    %8 = vector.broadcast %cst_6 : f32 to vector<32x1xf32>
    %9 = arith.mulf %7, %8 : vector<32x1xf32>
    %10 = vector.broadcast %9 : vector<32x1xf32> to vector<32x128xf32>
    %11 = arith.subf %5, %10 : vector<32x128xf32>
    %12 = tpu.iota {dimensions = array<i32: 1>} : vector<32x128xi32>
    %c64_i32 = arith.constant 64 : i32
    %13 = vector.broadcast %c64_i32 : i32 to vector<32x128xi32>
    %14 = arith.cmpi slt, %12, %13 : vector<32x128xi32>
    %cst_7 = arith.constant 0.000000e+00 : f32
    %15 = vector.broadcast %cst_7 : f32 to vector<32x128xf32>
    %16 = arith.select %14, %11, %15 : vector<32x128xi1>, vector<32x128xf32>
    %17 = arith.mulf %16, %16 : vector<32x128xf32>
    %cst_8 = arith.constant dense<0.000000e+00> : vector<32xf32>
    %18 = vector.multi_reduction <add>, %17, %cst_8 [1] : vector<32x128xf32> to vector<32xf32>
    %19 = vector.shape_cast %18 : vector<32xf32> to vector<32x1xf32>
    %cst_9 = arith.constant 1.562500e-02 : f32
    %20 = vector.broadcast %cst_9 : f32 to vector<32x1xf32>
    %21 = arith.mulf %19, %20 : vector<32x1xf32>
    %cst_10 = arith.constant 9.99999974E-6 : f32
    %22 = vector.broadcast %cst_10 : f32 to vector<32x1xf32>
    %23 = arith.addf %21, %22 : vector<32x1xf32>
    %24 = math.rsqrt %23 : vector<32x1xf32>
    %25 = vector.broadcast %24 : vector<32x1xf32> to vector<32x128xf32>
    %26 = arith.mulf %16, %25 : vector<32x128xf32>
    %c0_11 = arith.constant 0 : index
    %c0_12 = arith.constant 0 : index
    %27 = vector.load %arg4[%c0_11, %c0_12] : memref<1x128xf32, #tpu.memory_space<vmem>>, vector<1x128xf32>
    %28 = vector.broadcast %27 : vector<1x128xf32> to vector<32x128xf32>
    %29 = arith.mulf %26, %28 : vector<32x128xf32>
    %c0_13 = arith.constant 0 : index
    %c0_14 = arith.constant 0 : index
    %30 = vector.load %arg5[%c0_13, %c0_14] : memref<1x128xf32, #tpu.memory_space<vmem>>, vector<1x128xf32>
    %31 = vector.broadcast %30 : vector<1x128xf32> to vector<32x128xf32>
    %32 = arith.addf %29, %31 : vector<32x128xf32>
    %cst_15 = arith.constant 0.000000e+00 : f32
    %33 = vector.broadcast %cst_15 : f32 to vector<32x128xf32>
    %34 = arith.maximumf %32, %33 : vector<32x128xf32>
    %c0_16 = arith.constant 0 : index
    %c0_17 = arith.constant 0 : index
    %35 = vector.load %arg6[%c0_16, %c0_17] : memref<128x128xf32, #tpu.memory_space<vmem>>, vector<128x128xf32>
    %cst_18 = arith.constant dense<0.000000e+00> : vector<32x128xf32>
    %36 = tpu.matmul %34, %35, %cst_18 {dimension_numbers = #tpu.dot_dimension_numbers<[1], [0], [0], [1], [0, 0, 1, 1], [], []>} : vector<32x128xf32>, vector<128x128xf32>, vector<32x128xf32> -> vector<32x128xf32>
    %c0_19 = arith.constant 0 : index
    %c0_20 = arith.constant 0 : index
    %37 = vector.load %arg7[%c0_19, %c0_20] : memref<1x128xf32, #tpu.memory_space<vmem>>, vector<1x128xf32>
    %38 = vector.broadcast %37 : vector<1x128xf32> to vector<32x128xf32>
    %39 = arith.addf %36, %38 : vector<32x128xf32>
    %cst_21 = arith.constant dense<0.000000e+00> : vector<32xf32>
    %40 = vector.multi_reduction <add>, %39, %cst_21 [1] : vector<32x128xf32> to vector<32xf32>
    %41 = vector.shape_cast %40 : vector<32xf32> to vector<32x1xf32>
    %cst_22 = arith.constant 1.562500e-02 : f32
    %42 = vector.broadcast %cst_22 : f32 to vector<32x1xf32>
    %43 = arith.mulf %41, %42 : vector<32x1xf32>
    %44 = vector.broadcast %43 : vector<32x1xf32> to vector<32x128xf32>
    %45 = arith.subf %39, %44 : vector<32x128xf32>
    %46 = tpu.iota {dimensions = array<i32: 1>} : vector<32x128xi32>
    %c64_i32_23 = arith.constant 64 : i32
    %47 = vector.broadcast %c64_i32_23 : i32 to vector<32x128xi32>
    %48 = arith.cmpi slt, %46, %47 : vector<32x128xi32>
    %cst_24 = arith.constant 0.000000e+00 : f32
    %49 = vector.broadcast %cst_24 : f32 to vector<32x128xf32>
    %50 = arith.select %48, %45, %49 : vector<32x128xi1>, vector<32x128xf32>
    %51 = arith.mulf %50, %50 : vector<32x128xf32>
    %cst_25 = arith.constant dense<0.000000e+00> : vector<32xf32>
    %52 = vector.multi_reduction <add>, %51, %cst_25 [1] : vector<32x128xf32> to vector<32xf32>
    %53 = vector.shape_cast %52 : vector<32xf32> to vector<32x1xf32>
    %cst_26 = arith.constant 1.562500e-02 : f32
    %54 = vector.broadcast %cst_26 : f32 to vector<32x1xf32>
    %55 = arith.mulf %53, %54 : vector<32x1xf32>
    %cst_27 = arith.constant 9.99999974E-6 : f32
    %56 = vector.broadcast %cst_27 : f32 to vector<32x1xf32>
    %57 = arith.addf %55, %56 : vector<32x1xf32>
    %58 = math.rsqrt %57 : vector<32x1xf32>
    %59 = vector.broadcast %58 : vector<32x1xf32> to vector<32x128xf32>
    %60 = arith.mulf %50, %59 : vector<32x128xf32>
    %c0_28 = arith.constant 0 : index
    %c0_29 = arith.constant 0 : index
    %61 = vector.load %arg8[%c0_28, %c0_29] : memref<1x128xf32, #tpu.memory_space<vmem>>, vector<1x128xf32>
    %62 = vector.broadcast %61 : vector<1x128xf32> to vector<32x128xf32>
    %63 = arith.mulf %60, %62 : vector<32x128xf32>
    %c0_30 = arith.constant 0 : index
    %c0_31 = arith.constant 0 : index
    %64 = vector.load %arg9[%c0_30, %c0_31] : memref<1x128xf32, #tpu.memory_space<vmem>>, vector<1x128xf32>
    %65 = vector.broadcast %64 : vector<1x128xf32> to vector<32x128xf32>
    %66 = arith.addf %63, %65 : vector<32x128xf32>
    %cst_32 = arith.constant 0.000000e+00 : f32
    %67 = vector.broadcast %cst_32 : f32 to vector<32x128xf32>
    %68 = arith.maximumf %66, %67 : vector<32x128xf32>
    %c0_33 = arith.constant 0 : index
    %c0_34 = arith.constant 0 : index
    %69 = vector.load %arg10[%c0_33, %c0_34] : memref<128x128xf32, #tpu.memory_space<vmem>>, vector<128x128xf32>
    %cst_35 = arith.constant dense<0.000000e+00> : vector<32x128xf32>
    %70 = tpu.matmul %68, %69, %cst_35 {dimension_numbers = #tpu.dot_dimension_numbers<[1], [0], [0], [1], [0, 0, 1, 1], [], []>} : vector<32x128xf32>, vector<128x128xf32>, vector<32x128xf32> -> vector<32x128xf32>
    %c0_36 = arith.constant 0 : index
    %c0_37 = arith.constant 0 : index
    %71 = vector.load %arg11[%c0_36, %c0_37] : memref<1x128xf32, #tpu.memory_space<vmem>>, vector<1x128xf32>
    %72 = vector.broadcast %71 : vector<1x128xf32> to vector<32x128xf32>
    %73 = arith.addf %70, %72 : vector<32x128xf32>
    %c0_38 = arith.constant 0 : index
    %c0_39 = arith.constant 0 : index
    %74 = vector.load %arg12[%c0_38, %c0_39] : memref<32x128xf32, #tpu.memory_space<vmem>>, vector<32x128xf32>
    tpu.vector_store %arg12[%c0_38, %c0_39], %73 {strides = array<i32>} : memref<32x128xf32, #tpu.memory_space<vmem>>, vector<32x128xf32>,
    return
  }
  func.func @transform_0(%arg0: i32) -> (i32, i32) {
    %c0_i32 = arith.constant 0 : i32
    %c0_i32_0 = arith.constant 0 : i32
    return %arg0, %c0_i32 : i32, i32
  }
  func.func @transform_1(%arg0: i32) -> (i32, i32) {
    %c0_i32 = arith.constant 0 : i32
    %c0_i32_0 = arith.constant 0 : i32
    %c0_i32_1 = arith.constant 0 : i32
    return %c0_i32, %c0_i32_0 : i32, i32
  }
  func.func @transform_2(%arg0: i32) -> (i32, i32) {
    %c0_i32 = arith.constant 0 : i32
    %c0_i32_0 = arith.constant 0 : i32
    %c0_i32_1 = arith.constant 0 : i32
    return %c0_i32, %c0_i32_0 : i32, i32
  }
  func.func @transform_3(%arg0: i32) -> (i32, i32) {
    %c0_i32 = arith.constant 0 : i32
    %c0_i32_0 = arith.constant 0 : i32
    %c0_i32_1 = arith.constant 0 : i32
    return %c0_i32, %c0_i32_0 : i32, i32
  }
  func.func @transform_4(%arg0: i32) -> (i32, i32) {
    %c0_i32 = arith.constant 0 : i32
    %c0_i32_0 = arith.constant 0 : i32
    %c0_i32_1 = arith.constant 0 : i32
    return %c0_i32, %c0_i32_0 : i32, i32
  }
  func.func @transform_5(%arg0: i32) -> (i32, i32) {
    %c0_i32 = arith.constant 0 : i32
    %c0_i32_0 = arith.constant 0 : i32
    %c0_i32_1 = arith.constant 0 : i32
    return %c0_i32, %c0_i32_0 : i32, i32
  }
  func.func @transform_6(%arg0: i32) -> (i32, i32) {
    %c0_i32 = arith.constant 0 : i32
    %c0_i32_0 = arith.constant 0 : i32
    %c0_i32_1 = arith.constant 0 : i32
    return %c0_i32, %c0_i32_0 : i32, i32
  }
  func.func @transform_7(%arg0: i32) -> (i32, i32) {
    %c0_i32 = arith.constant 0 : i32
    %c0_i32_0 = arith.constant 0 : i32
    %c0_i32_1 = arith.constant 0 : i32
    return %c0_i32, %c0_i32_0 : i32, i32
  }
  func.func @transform_8(%arg0: i32) -> (i32, i32) {
    %c0_i32 = arith.constant 0 : i32
    %c0_i32_0 = arith.constant 0 : i32
    %c0_i32_1 = arith.constant 0 : i32
    return %c0_i32, %c0_i32_0 : i32, i32
  }
  func.func @transform_9(%arg0: i32) -> (i32, i32) {
    %c0_i32 = arith.constant 0 : i32
    %c0_i32_0 = arith.constant 0 : i32
    %c0_i32_1 = arith.constant 0 : i32
    return %c0_i32, %c0_i32_0 : i32, i32
  }
  func.func @transform_10(%arg0: i32) -> (i32, i32) {
    %c0_i32 = arith.constant 0 : i32
    %c0_i32_0 = arith.constant 0 : i32
    %c0_i32_1 = arith.constant 0 : i32
    return %c0_i32, %c0_i32_0 : i32, i32
  }
  func.func @transform_11(%arg0: i32) -> (i32, i32) {
    %c0_i32 = arith.constant 0 : i32
    %c0_i32_0 = arith.constant 0 : i32
    return %arg0, %c0_i32 : i32, i32
  }
}

</mosaic_0001>

<bundles_post_ra>
// kernel: tpu_custom_call.1
= control target key start
LH: loop header
LB: loop body
LE: loop exit
PB: predicated region body
PF: predicated region fallthrough
CT: control target
= control target key end

     0   :  { %16 = vsyncpa [#allocation3], 0  ;;  %s1117_s0 = inlined_call_operand.hbm [shape: f32[32,128], index: 0, kind: input, shape index: {}]   ;;  %s1118_s1 = inlined_call_operand.hbm [shape: f32[128,128], index: 1, kind: input, shape index: {}]   ;;  %s1119_s2 = inlined_call_operand.vmem [shape: f32[1,128], index: 2, kind: input, shape index: {}]   ;;  %s1120_s3 = inlined_call_operand.vmem [shape: f32[1,128], index: 3, kind: input, shape index: {}]   ;;  %s1121_s4 = inlined_call_operand.vmem [shape: f32[1,128], index: 4, kind: input, shape index: {}]   ;;  %s1122_s5 = inlined_call_operand.hbm [shape: f32[128,128], index: 5, kind: input, shape index: {}]   ;;  %s1123_s6 = inlined_call_operand.vmem [shape: f32[1,128], index: 6, kind: input, shape index: {}]   ;;  %s1124_s7 = inlined_call_operand.vmem [shape: f32[1,128], index: 7, kind: input, shape index: {}]   ;;  %s1125_s8 = inlined_call_operand.vmem [shape: f32[1,128], index: 8, kind: input, shape index: {}]   ;;  %s1126_s9 = inlined_call_operand.hbm [shape: f32[128,128], index: 9, kind: input, shape index: {}]   ;;  %s1127_s10 = inlined_call_operand.vmem [shape: f32[1,128], index: 10, kind: input, shape index: {}]   ;;  %s1128_s11 = inlined_call_operand.hbm [shape: f32[32,128], index: 11, kind: output, shape index: {}]  }
   0x1   :  { %17 = vsyncpa [#allocation6], 0 }
   0x2   :  { %18 = vsyncpa [#allocation9], 0 }
   0x3   :  { %19 = vsyncpa [#allocation4], 0  ;;  %s940_s17 = smov [#allocation5]   ;;  %s941_s19 = smov [#allocation2]  }
   0x4   :  { %s37_s18 = sshll.u32 %s940_s17, 4  ;;  %s25_s20 = sshll.u32 %s941_s19, 4  ;;  %s38_s18 = int_to_ptr.vmem [resolvable:$true] %s37_s18  ;;  %s26_s20 = int_to_ptr.vmem [resolvable:$true] %s25_s20 }
   0x5   :  { %s840_s21 = scalar_lea.vmem %s38_s18, 2048  ;;  %p845_p1 = scmp.lt.s32.totalorder %s38_s18, %s38_s18 }
   0x6   :  { %p841_p0 = scmp.ne.s32.totalorder %s38_s18, %s840_s21  ;;  %p846_p2 = scmp.lt.s32.totalorder %s840_s21, %s840_s21 }
   0x8   :  { %p847_p3 = por %p846_p2, %p845_p1 }
   0xa   :  { %p848_p4 = pnand %p847_p3, %p841_p0 }
   0xc   :  { %851 = shalt.err (!%p848_p4)
}
   0xd   :  { %s942_s22 = smov 128   ;;  %s943_s23 = smov 8  }
   0xe   :  { %43 = dma.hbm_to_vmem [thread:$0]  %s1118_s1, 2048, %s38_s18, [#allocation6], %s942_s22, %s942_s22, %s943_s23  }
   0xf   :  { %s860_s26 = scalar_lea.vmem %s26_s20, 512  ;;  %p865_p6 = scmp.lt.s32.totalorder %s26_s20, %s26_s20 }
  0x10   :  { %p861_p5 = scmp.ne.s32.totalorder %s26_s20, %s860_s26  ;;  %p866_p7 = scmp.lt.s32.totalorder %s860_s26, %s860_s26 }
  0x12   :  { %p867_p8 = por %p866_p7, %p865_p6 }
  0x14   :  { %p868_p9 = pnand %p867_p8, %p861_p5 }
  0x16   :  { %871 = shalt.err (!%p868_p9)
}
  0x17   :  { %31 = dma.hbm_to_vmem [thread:$0]  %s1117_s0, 512, %s26_s20, [#allocation3], %s942_s22, %s942_s22, %s943_s23  }
  0x18   :  { %s944_s29 = smov [#allocation7]   ;;  %s945_s12 = smov [#allocation8]  }
  0x19   :  { %s55_s30 = sshll.u32 %s944_s29, 4  ;;  %s73_s13 = sshll.u32 %s945_s12, 4  ;;  %s56_s30 = int_to_ptr.vmem [resolvable:$true] %s55_s30  ;;  %s74_s13 = int_to_ptr.vmem [resolvable:$true] %s73_s13 }
  0x1a   :  { %s880_s1 = scalar_lea.vmem %s56_s30, 2048  ;;  %p885_p11 = scmp.lt.s32.totalorder %s56_s30, %s56_s30 }
  0x1b   :  { %p881_p10 = scmp.ne.s32.totalorder %s56_s30, %s880_s1  ;;  %p886_p12 = scmp.lt.s32.totalorder %s880_s1, %s880_s1 }
  0x1d   :  { %p887_p13 = por %p886_p12, %p885_p11 }
  0x1f   :  { %p888_p0 = pnand %p887_p13, %p881_p10 }
  0x21   :  { %891 = shalt.err (!%p888_p0)
}
  0x22   :  { %61 = dma.hbm_to_vmem [thread:$0]  %s1122_s5, 2048, %s56_s30, [#allocation6], %s942_s22, %s942_s22, %s943_s23  }
  0x23   :  { %s900_s0 = scalar_lea.vmem %s74_s13, 2048  ;;  %p905_p2 = scmp.lt.s32.totalorder %s74_s13, %s74_s13 }
  0x24   :  { %p901_p1 = scmp.ne.s32.totalorder %s74_s13, %s900_s0  ;;  %p906_p3 = scmp.lt.s32.totalorder %s900_s0, %s900_s0 }
  0x26   :  { %p907_p4 = por %p906_p3, %p905_p2 }
  0x28   :  { %p908_p5 = pnand %p907_p4, %p901_p1 }
  0x2a   :  { %911 = shalt.err (!%p908_p5)
}
  0x2b   :  { %79 = dma.hbm_to_vmem [thread:$0]  %s1126_s9, 2048, %s74_s13, [#allocation9], %s942_s22, %s942_s22, %s943_s23  }
  0x2c   :  { %932 = dma.done.wait [#allocation3], 512  }
  0x2d   :  { %933 = vsyncadd [#allocation3], 4294966784 }
  0x2e   :  { %934 = dma.done.wait [#allocation6], 4096  }
  0x2f   :  { %935 = vsyncadd [#allocation6], 4294963200 }
  0x30   :  { %936 = dma.done.wait [#allocation9], 2048  }
  0x31   :  { %937 = vsyncadd [#allocation9], 4294965248  ;;  %v113_v0 = vld [vmem:[#allocation5 + $0x78] sm:$0xff]  ;;  %v112_v1 = vld [vmem:[#allocation5 + $0x70] sm:$0xff]  ;;  %v222_v30 = vlaneseq  ;;  %s946_s26 = smov [#allocation10]  }
  0x32   :  { %663 = vmatprep.subr.mxu0 %v113_v0  ;;  %v111_v2 = vld [vmem:[#allocation5 + $0x68] sm:$0xff]  ;;  %v110_v3 = vld [vmem:[#allocation5 + $0x60] sm:$0xff]  ;;  %v109_v5 = vld [vmem:[#allocation5 + $0x58] sm:$0xff]  ;;  %s582_s27 = sshll.u32 %s946_s26, 4  ;;  %s583_s27 = int_to_ptr.vmem [resolvable:$true] %s582_s27 }
  0x33   :  { %664 = vmatpush3.msra.mxu0 %v113_v0  ;;  %v94_v4 = vld [vmem:[#allocation2] sm:$0xff]  ;;  %v108_v6 = vld [vmem:[#allocation5 + $0x50] sm:$0xff]  ;;  %v107_v7 = vld [vmem:[#allocation5 + $0x48] sm:$0xff]  ;;  %v1034_v31 = vand.u32 127, %v222_v30  ;;  %s912_s28 = scalar_lea.vmem %s583_s27, 512  ;;  %p917_p7 = scmp.lt.s32.totalorder %s583_s27, %s583_s27 }
  0x34   :  { %665 = vmatprep.subr.mxu0 %v112_v1  ;;  %695 = vmatprep.mubr.f32.mxu0 %v94_v4  ;;  %v106_v8 = vld [vmem:[#allocation5 + $0x40] sm:$0xff]  ;;  %v105_v9 = vld [vmem:[#allocation5 + $0x38] sm:$0xff]  ;;  %v104_v10 = vld [vmem:[#allocation5 + $0x30] sm:$0xff]  ;;  %p913_p6 = scmp.ne.s32.totalorder %s583_s27, %s912_s28  ;;  %p918_p8 = scmp.lt.s32.totalorder %s912_s28, %s912_s28 }
  0x35   :  { %666 = vmatpush3.msra.mxu0 %v112_v1  ;;  %v103_v11 = vld [vmem:[#allocation5 + $0x28] sm:$0xff]  ;;  %v102_v12 = vld [vmem:[#allocation5 + $0x20] sm:$0xff]  ;;  %v101_v13 = vld [vmem:[#allocation5 + $0x18] sm:$0xff]  ;;  %vm224_vm0 = vcmp.lt.s32.totalorder %v1034_v31, 64 }
  0x36   :  { %667 = vmatprep.subr.mxu0 %v111_v2  ;;  %v100_v14 = vld [vmem:[#allocation5 + $0x10] sm:$0xff]  ;;  %v99_v15 = vld [vmem:[#allocation5 + $0x8] sm:$0xff]  ;;  %v98_v16 = vld [vmem:[#allocation5] sm:$0xff]  ;;  %p919_p9 = por %p918_p8, %p917_p7 }
  0x37   :  { %668 = vmatpush3.msra.mxu0 %v111_v2  ;;  %v95_v17 = vld [vmem:[#allocation2 + $0x8] sm:$0xff]  ;;  %v96_v18 = vld [vmem:[#allocation2 + $0x10] sm:$0xff]  ;;  %v97_v19 = vld [vmem:[#allocation2 + $0x18] sm:$0xff] }
  0x38   :  { %669 = vmatprep.subr.mxu0 %v110_v3  ;;  %v596_v21 = vld [vmem:[%s1119_s2] ss:$0 sm:$0xff]  ;;  %v298_v29 = vld [vmem:[#allocation7 + $0x78] sm:$0xff]  ;;  %v297_v52 = vld [vmem:[#allocation7 + $0x70] sm:$0xff]  ;;  %p920_p10 = pnand %p919_p9, %p913_p6 }
  0x39   :  { %670 = vmatpush3.msra.mxu0 %v110_v3  ;;  %701 = vmatprep.subr.mxu1 %v298_v29  ;;  %v296_v53 = vld [vmem:[#allocation7 + $0x68] sm:$0xff]  ;;  %v295_v54 = vld [vmem:[#allocation7 + $0x60] sm:$0xff]  ;;  %v294_v55 = vld [vmem:[#allocation7 + $0x58] sm:$0xff] }
  0x3a   :  { %671 = vmatprep.subr.mxu0 %v109_v5  ;;  %702 = vmatpush3.msra.mxu1 %v298_v29  ;;  %v293_v56 = vld [vmem:[#allocation7 + $0x50] sm:$0xff]  ;;  %v292_v57 = vld [vmem:[#allocation7 + $0x48] sm:$0xff]  ;;  %v291_v58 = vld [vmem:[#allocation7 + $0x40] sm:$0xff] }
  0x3b   :  { %672 = vmatpush3.msra.mxu0 %v109_v5  ;;  %703 = vmatprep.subr.mxu1 %v297_v52  ;;  %v290_v59 = vld [vmem:[#allocation7 + $0x38] sm:$0xff]  ;;  %v289_v60 = vld [vmem:[#allocation7 + $0x30] sm:$0xff]  ;;  %v288_v61 = vld [vmem:[#allocation7 + $0x28] sm:$0xff] }
  0x3c   :  { %673 = vmatprep.subr.mxu0 %v108_v6  ;;  %704 = vmatpush3.msra.mxu1 %v297_v52  ;;  %v287_v62 = vld [vmem:[#allocation7 + $0x20] sm:$0xff]  ;;  %v286_v63 = vld [vmem:[#allocation7 + $0x18] sm:$0xff]  ;;  %v285_v0 = vld [vmem:[#allocation7 + $0x10] sm:$0xff] }
  0x3d   :  { %674 = vmatpush3.msra.mxu0 %v108_v6  ;;  %705 = vmatprep.subr.mxu1 %v296_v53  ;;  %v284_v1 = vld [vmem:[#allocation7 + $0x8] sm:$0xff]  ;;  %v283_v2 = vld [vmem:[#allocation7] sm:$0xff]  ;;  %v476_v31 = vld [vmem:[#allocation8 + $0x58] sm:$0xff] }
  0x3e   :  { %675 = vmatprep.subr.mxu0 %v107_v7  ;;  %706 = vmatpush3.msra.mxu1 %v296_v53 }
  0x3f   :  { %676 = vmatpush3.msra.mxu0 %v107_v7  ;;  %707 = vmatprep.subr.mxu1 %v295_v54 }
  0x40   :  { %677 = vmatprep.subr.mxu0 %v106_v8  ;;  %708 = vmatpush3.msra.mxu1 %v295_v54 }
  0x41   :  { %678 = vmatpush3.msra.mxu0 %v106_v8  ;;  %709 = vmatprep.subr.mxu1 %v294_v55 }
  0x42   :  { %679 = vmatprep.subr.mxu0 %v105_v9  ;;  %710 = vmatpush3.msra.mxu1 %v294_v55 }
  0x43   :  { %680 = vmatpush3.msra.mxu0 %v105_v9  ;;  %711 = vmatprep.subr.mxu1 %v293_v56 }
  0x44   :  { %681 = vmatprep.subr.mxu0 %v104_v10  ;;  %712 = vmatpush3.msra.mxu1 %v293_v56 }
  0x45   :  { %682 = vmatpush3.msra.mxu0 %v104_v10  ;;  %713 = vmatprep.subr.mxu1 %v292_v57 }
  0x46   :  { %683 = vmatprep.subr.mxu0 %v103_v11  ;;  %714 = vmatpush3.msra.mxu1 %v292_v57 }
  0x47   :  { %684 = vmatpush3.msra.mxu0 %v103_v11  ;;  %715 = vmatprep.subr.mxu1 %v291_v58 }
  0x48   :  { %685 = vmatprep.subr.mxu0 %v102_v12  ;;  %716 = vmatpush3.msra.mxu1 %v291_v58 }
  0x49   :  { %686 = vmatpush3.msra.mxu0 %v102_v12  ;;  %717 = vmatprep.subr.mxu1 %v290_v59 }
  0x4a   :  { %687 = vmatprep.subr.mxu0 %v101_v13  ;;  %718 = vmatpush3.msra.mxu1 %v290_v59 }
  0x4b   :  { %688 = vmatpush3.msra.mxu0 %v101_v13  ;;  %719 = vmatprep.subr.mxu1 %v289_v60 }
  0x4c   :  { %689 = vmatprep.subr.mxu0 %v100_v14  ;;  %720 = vmatpush3.msra.mxu1 %v289_v60 }
  0x4d   :  { %690 = vmatpush3.msra.mxu0 %v100_v14  ;;  %721 = vmatprep.subr.mxu1 %v288_v61 }
  0x4e   :  { %691 = vmatprep.subr.mxu0 %v99_v15  ;;  %722 = vmatpush3.msra.mxu1 %v288_v61 }
  0x4f   :  { %692 = vmatpush3.msra.mxu0 %v99_v15  ;;  %723 = vmatprep.subr.mxu1 %v287_v62 }
  0x50   :  { %693 = vmatprep.subr.mxu0 %v98_v16  ;;  %724 = vmatpush3.msra.mxu1 %v287_v62 }
  0x51   :  { %694 = vmatpush3.msra.mxu0 %v98_v16  ;;  %725 = vmatprep.subr.mxu1 %v286_v63  ;;  %v597_v16 = vld [vmem:[%s1120_s3] ss:$0 sm:$0xff] }
  0x52   :  { %696 = vmatmul.mubr.f32.vlgmr.msra.gmra.mxu0 %v95_v17  ;;  %726 = vmatpush3.msra.mxu1 %v286_v63 }
  0x53   :  { %698 = vmatprep.mubr.f32.mxu0 %v96_v18  ;;  %727 = vmatprep.subr.mxu1 %v285_v0  ;;  %v598_v18 = vld [vmem:[%s1121_s4] ss:$0 sm:$0xff] }
  0x54   :  { %728 = vmatpush3.msra.mxu1 %v285_v0 }
  0x55   :  { %729 = vmatprep.subr.mxu1 %v284_v1 }
  0x56   :  { %699 = vmatmul.mubr.f32.gmra.mxu0 %v97_v19  ;;  %730 = vmatpush3.msra.mxu1 %v284_v1 }
  0x57   :  { %731 = vmatprep.subr.mxu1 %v283_v2 }
  0x58   :  { %732 = vmatpush3.msra.mxu1 %v283_v2 }
 0x112   :  { %v697_v20 = vpop.f32.mrf.mxu0 }
 0x113   :  { %v193_v26 = vadd.f32 %v697_v20, %v596_v21 }
 0x114   :  { %v187_v22 = vpop.f32.mrf.mxu0 }
 0x115   :  { %v188_v23 = vadd.f32 %v596_v21, %v187_v22 }
 0x116   :  { %v700_v24 = vpop.f32.mrf.mxu0 }
 0x117   :  { %206 = vadd.xlane.f32.xlu0 %v188_v23  ;;  %v203_v28 = vadd.f32 %v700_v24, %v596_v21 }
 0x118   :  { %v197_v25 = vpop.f32.mrf.mxu0 }
 0x119   :  { %v198_v27 = vadd.f32 %v596_v21, %v197_v25 }
 0x11b   :  { %210 = vadd.xlane.f32.xlu1 %v198_v27  ;;  %208 = vadd.xlane.f32.xlu0 %v193_v26 }
 0x11f   :  { %212 = vadd.xlane.f32.xlu1 %v203_v28 }
 0x1a0   :  { %v207_v32 = vpop.xlane.xlu0 %206 }
 0x1a1   :  { %v214_v33 = vmul.f32 0.015625, %v207_v32 }
 0x1a3   :  { %v218_v34 = vsub.f32 %v188_v23, %v214_v33 }
 0x1a4   :  { %v211_v35 = vpop.xlane.xlu1 %210  ;;  %v209_v36 = vpop.xlane.xlu0 %208 }
 0x1a5   :  { %v216_v37 = vmul.f32 0.015625, %v211_v35  ;;  %v215_v38 = vmul.f32 0.015625, %v209_v36  ;;  %v1039_v39 = vsel %vm224_vm0, %v218_v34, 0.0 }
 0x1a6   :  { %v229_v40 = vmul.f32 %v1039_v39, %v1039_v39 }
 0x1a7   :  { %v220_v41 = vsub.f32 %v198_v27, %v216_v37  ;;  %v219_v42 = vsub.f32 %v193_v26, %v215_v38 }
 0x1a8   :  { %v213_v43 = vpop.xlane.xlu1 %212  ;;  %233 = vadd.xlane.f32.xlu0 %v229_v40 }
 0x1a9   :  { %v217_v44 = vmul.f32 0.015625, %v213_v43  ;;  %v1045_v45 = vsel %vm224_vm0, %v220_v41, 0.0  ;;  %v1049_v46 = vsel %vm224_vm0, %v219_v42, 0.0 }
 0x1aa   :  { %v231_v47 = vmul.f32 %v1045_v45, %v1045_v45  ;;  %v230_v48 = vmul.f32 %v1049_v46, %v1049_v46 }
 0x1ab   :  { %v221_v49 = vsub.f32 %v203_v28, %v217_v44 }
 0x1ac   :  { %237 = vadd.xlane.f32.xlu0 %v231_v47  ;;  %235 = vadd.xlane.f32.xlu1 %v230_v48  ;;  %v480_v47 = vld [vmem:[#allocation8 + $0x78] sm:$0xff] }
 0x1ad   :  { %v1057_v50 = vsel %vm224_vm0, %v221_v49, 0.0  ;;  %739 = vmatprep.subr.mxu0 %v480_v47  ;;  %777 = vmatprep.subr.mxu1 %v480_v47 }
 0x1ae   :  { %v232_v51 = vmul.f32 %v1057_v50, %v1057_v50  ;;  %740 = vmatpush3.msra.mxu0 %v480_v47 }
 0x1b0   :  { %239 = vadd.xlane.f32.xlu1 %v232_v51 }
 0x231   :  { %v234_v3 = vpop.xlane.xlu0 %233 }
 0x232   :  { %v241_v4 = vmul.f32 0.015625, %v234_v3 }
 0x234   :  { %v245_v5 = vadd.f32 1e-05, %v241_v4  ;;  %v479_v4 = vld [vmem:[#allocation8 + $0x70] sm:$0xff] }
 0x235   :  { %v236_v6 = vpop.xlane.xlu1 %235  ;;  %v238_v7 = vpop.xlane.xlu0 %237  ;;  %741 = vmatprep.subr.mxu0 %v479_v4 }
 0x236   :  { %816 = vrsqrt.f32 %v245_v5  ;;  %v242_v8 = vmul.f32 0.015625, %v236_v6  ;;  %v243_v9 = vmul.f32 0.015625, %v238_v7  ;;  %742 = vmatpush3.msra.mxu0 %v479_v4  ;;  %v478_v5 = vld [vmem:[#allocation8 + $0x68] sm:$0xff]  ;;  %v477_v6 = vld [vmem:[#allocation8 + $0x60] sm:$0xff]  ;;  %v475_v7 = vld [vmem:[#allocation8 + $0x50] sm:$0xff] }
 0x237   :  { %743 = vmatprep.subr.mxu0 %v478_v5 }
 0x238   :  { %v246_v10 = vadd.f32 1e-05, %v242_v8  ;;  %v247_v11 = vadd.f32 1e-05, %v243_v9  ;;  %744 = vmatpush3.msra.mxu0 %v478_v5  ;;  %v474_v8 = vld [vmem:[#allocation8 + $0x48] sm:$0xff]  ;;  %v473_v9 = vld [vmem:[#allocation8 + $0x40] sm:$0xff] }
 0x239   :  { %v240_v12 = vpop.xlane.xlu1 %239  ;;  %745 = vmatprep.subr.mxu0 %v477_v6 }
 0x23a   :  { %818 = vrsqrt.f32 %v246_v10  ;;  %v244_v13 = vmul.f32 0.015625, %v240_v12  ;;  %746 = vmatpush3.msra.mxu0 %v477_v6  ;;  %v472_v10 = vld [vmem:[#allocation8 + $0x38] sm:$0xff]  ;;  %v470_v12 = vld [vmem:[#allocation8 + $0x28] sm:$0xff] }
 0x23b   :  { %820 = vrsqrt.f32 %v247_v11  ;;  %747 = vmatprep.subr.mxu0 %v476_v31  ;;  %v471_v11 = vld [vmem:[#allocation8 + $0x30] sm:$0xff] }
 0x23c   :  { %v248_v14 = vadd.f32 1e-05, %v244_v13  ;;  %748 = vmatpush3.msra.mxu0 %v476_v31  ;;  %v469_v13 = vld [vmem:[#allocation8 + $0x20] sm:$0xff] }
 0x23d   :  { %749 = vmatprep.subr.mxu0 %v475_v7 }
 0x23e   :  { %822 = vrsqrt.f32 %v248_v14  ;;  %750 = vmatpush3.msra.mxu0 %v475_v7  ;;  %v468_v14 = vld [vmem:[#allocation8 + $0x18] sm:$0xff] }
 0x23f   :  { %751 = vmatprep.subr.mxu0 %v474_v8 }
 0x240   :  { %752 = vmatpush3.msra.mxu0 %v474_v8 }
 0x241   :  { %753 = vmatprep.subr.mxu0 %v473_v9 }
 0x242   :  { %754 = vmatpush3.msra.mxu0 %v473_v9 }
 0x243   :  { %v817_v15 = vpop.eup %816  ;;  %755 = vmatprep.subr.mxu0 %v472_v10 }
 0x244   :  { %v253_v17 = vmul.f32 %v817_v15, %v1039_v39  ;;  %v599_v39 = vld [vmem:[%s1123_s6] ss:$0 sm:$0xff]  ;;  %756 = vmatpush3.msra.mxu0 %v472_v10  ;;  %v467_v15 = vld [vmem:[#allocation8 + $0x10] sm:$0xff] }
 0x245   :  { %757 = vmatprep.subr.mxu0 %v471_v11 }
 0x246   :  { %v264_v19 = vmul.f32 %v597_v16, %v253_v17  ;;  %758 = vmatpush3.msra.mxu0 %v471_v11  ;;  %v465_v17 = vld [vmem:[#allocation8] sm:$0xff] }
 0x247   :  { %v819_v20 = vpop.eup %818  ;;  %759 = vmatprep.subr.mxu0 %v470_v12 }
 0x248   :  { %v821_v21 = vpop.eup %820  ;;  %v275_v22 = vadd.f32 %v598_v18, %v264_v19  ;;  %v254_v23 = vmul.f32 %v819_v20, %v1049_v46  ;;  %760 = vmatpush3.msra.mxu0 %v470_v12 }
 0x249   :  { %v255_v24 = vmul.f32 %v821_v21, %v1045_v45  ;;  %761 = vmatprep.subr.mxu0 %v469_v13 }
 0x24a   :  { %v279_v25 = vmax.f32 %v275_v22, 0.0  ;;  %v265_v26 = vmul.f32 %v597_v16, %v254_v23  ;;  %762 = vmatpush3.msra.mxu0 %v469_v13 }
 0x24b   :  { %v823_v27 = vpop.eup %822  ;;  %v266_v28 = vmul.f32 %v597_v16, %v255_v24  ;;  %763 = vmatprep.subr.mxu0 %v468_v14 }
 0x24c   :  { %733 = vmatprep.mubr.f32.mxu1 %v279_v25  ;;  %v276_v29 = vadd.f32 %v598_v18, %v265_v26  ;;  %v256_v30 = vmul.f32 %v823_v27, %v1057_v50  ;;  %764 = vmatpush3.msra.mxu0 %v468_v14 }
 0x24d   :  { %v277_v32 = vadd.f32 %v598_v18, %v266_v28  ;;  %765 = vmatprep.subr.mxu0 %v467_v15 }
 0x24e   :  { %v280_v33 = vmax.f32 %v276_v29, 0.0  ;;  %v267_v34 = vmul.f32 %v597_v16, %v256_v30  ;;  %766 = vmatpush3.msra.mxu0 %v467_v15  ;;  %v466_v16 = vld [vmem:[#allocation8 + $0x8] sm:$0xff] }
 0x24f   :  { %v281_v35 = vmax.f32 %v277_v32, 0.0  ;;  %767 = vmatprep.subr.mxu0 %v466_v16  ;;  %v600_v32 = vld [vmem:[%s1124_s7] ss:$0 sm:$0xff] }
 0x250   :  { %734 = vmatmul.mubr.f32.vlgmr.msra.gmra.mxu1 %v280_v33  ;;  %v278_v36 = vadd.f32 %v598_v18, %v267_v34  ;;  %768 = vmatpush3.msra.mxu0 %v466_v16  ;;  %v601_v34 = vld [vmem:[%s1125_s8] ss:$0 sm:$0xff] }
 0x251   :  { %736 = vmatprep.mubr.f32.mxu1 %v281_v35  ;;  %793 = vmatpush3.msra.mxu1 %v480_v47 }
 0x252   :  { %v282_v37 = vmax.f32 %v278_v36, 0.0  ;;  %778 = vmatprep.subr.mxu1 %v479_v4  ;;  %769 = vmatprep.subr.mxu0 %v465_v17 }
 0x253   :  { %794 = vmatpush3.msra.mxu1 %v479_v4  ;;  %770 = vmatpush3.msra.mxu0 %v465_v17 }
 0x254   :  { %737 = vmatmul.mubr.f32.gmra.mxu1 %v282_v37  ;;  %779 = vmatprep.subr.mxu1 %v478_v5 }
 0x255   :  { %795 = vmatpush3.msra.mxu1 %v478_v5 }
 0x256   :  { %780 = vmatprep.subr.mxu1 %v477_v6 }
 0x257   :  { %796 = vmatpush3.msra.mxu1 %v477_v6 }
 0x258   :  { %781 = vmatprep.subr.mxu1 %v476_v31 }
 0x259   :  { %797 = vmatpush3.msra.mxu1 %v476_v31 }
 0x25a   :  { %782 = vmatprep.subr.mxu1 %v475_v7 }
 0x25b   :  { %798 = vmatpush3.msra.mxu1 %v475_v7 }
 0x25c   :  { %783 = vmatprep.subr.mxu1 %v474_v8 }
 0x25d   :  { %799 = vmatpush3.msra.mxu1 %v474_v8 }
 0x25e   :  { %784 = vmatprep.subr.mxu1 %v473_v9 }
 0x25f   :  { %800 = vmatpush3.msra.mxu1 %v473_v9 }
 0x260   :  { %785 = vmatprep.subr.mxu1 %v472_v10 }
 0x261   :  { %801 = vmatpush3.msra.mxu1 %v472_v10 }
 0x262   :  { %786 = vmatprep.subr.mxu1 %v471_v11 }
 0x263   :  { %802 = vmatpush3.msra.mxu1 %v471_v11 }
 0x264   :  { %787 = vmatprep.subr.mxu1 %v470_v12 }
 0x265   :  { %803 = vmatpush3.msra.mxu1 %v470_v12 }
 0x266   :  { %788 = vmatprep.subr.mxu1 %v469_v13 }
 0x267   :  { %804 = vmatpush3.msra.mxu1 %v469_v13 }
 0x268   :  { %789 = vmatprep.subr.mxu1 %v468_v14 }
 0x269   :  { %805 = vmatpush3.msra.mxu1 %v468_v14 }
 0x26a   :  { %790 = vmatprep.subr.mxu1 %v467_v15 }
 0x26b   :  { %806 = vmatpush3.msra.mxu1 %v467_v15 }
 0x26c   :  { %791 = vmatprep.subr.mxu1 %v466_v16 }
 0x26d   :  { %807 = vmatpush3.msra.mxu1 %v466_v16 }
 0x26e   :  { %792 = vmatprep.subr.mxu1 %v465_v17 }
 0x26f   :  { %808 = vmatpush3.msra.mxu1 %v465_v17 }
 0x310   :  { %v735_v38 = vpop.f32.mrf.mxu1 }
 0x311   :  { %v378_v44 = vadd.f32 %v735_v38, %v599_v39 }
 0x312   :  { %v372_v40 = vpop.f32.mrf.mxu1 }
 0x313   :  { %v373_v41 = vadd.f32 %v599_v39, %v372_v40 }
 0x314   :  { %v738_v42 = vpop.f32.mrf.mxu1 }
 0x315   :  { %391 = vadd.xlane.f32.xlu0 %v373_v41  ;;  %v388_v46 = vadd.f32 %v738_v42, %v599_v39 }
 0x316   :  { %v382_v43 = vpop.f32.mrf.mxu1 }
 0x317   :  { %v383_v45 = vadd.f32 %v599_v39, %v382_v43 }
 0x319   :  { %393 = vadd.xlane.f32.xlu0 %v378_v44  ;;  %395 = vadd.xlane.f32.xlu1 %v383_v45 }
 0x31d   :  { %397 = vadd.xlane.f32.xlu1 %v388_v46 }
 0x39e   :  { %v392_v48 = vpop.xlane.xlu0 %391 }
 0x39f   :  { %v399_v49 = vmul.f32 0.015625, %v392_v48 }
 0x3a1   :  { %v403_v50 = vsub.f32 %v373_v41, %v399_v49 }
 0x3a2   :  { %v396_v51 = vpop.xlane.xlu1 %395  ;;  %v394_v52 = vpop.xlane.xlu0 %393 }
 0x3a3   :  { %v401_v53 = vmul.f32 0.015625, %v396_v51  ;;  %v400_v54 = vmul.f32 0.015625, %v394_v52  ;;  %v1076_v55 = vsel %vm224_vm0, %v403_v50, 0.0 }
 0x3a4   :  { %v411_v56 = vmul.f32 %v1076_v55, %v1076_v55 }
 0x3a5   :  { %v405_v57 = vsub.f32 %v383_v45, %v401_v53  ;;  %v404_v58 = vsub.f32 %v378_v44, %v400_v54  ;;  %v602_v53 = vld [vmem:[%s1127_s10] ss:$0 sm:$0xff] }
 0x3a6   :  { %v398_v59 = vpop.xlane.xlu1 %397  ;;  %415 = vadd.xlane.f32.xlu0 %v411_v56 }
 0x3a7   :  { %v402_v60 = vmul.f32 0.015625, %v398_v59  ;;  %v1082_v61 = vsel %vm224_vm0, %v405_v57, 0.0  ;;  %v1086_v62 = vsel %vm224_vm0, %v404_v58, 0.0 }
 0x3a8   :  { %v413_v63 = vmul.f32 %v1082_v61, %v1082_v61  ;;  %v412_v0 = vmul.f32 %v1086_v62, %v1086_v62 }
 0x3a9   :  { %v406_v1 = vsub.f32 %v388_v46, %v402_v60 }
 0x3aa   :  { %419 = vadd.xlane.f32.xlu1 %v413_v63  ;;  %417 = vadd.xlane.f32.xlu0 %v412_v0 }
 0x3ab   :  { %v1094_v2 = vsel %vm224_vm0, %v406_v1, 0.0 }
 0x3ac   :  { %v414_v3 = vmul.f32 %v1094_v2, %v1094_v2 }
 0x3ae   :  { %421 = vadd.xlane.f32.xlu1 %v414_v3 }
 0x42f   :  { %v416_v18 = vpop.xlane.xlu0 %415 }
 0x430   :  { %v423_v19 = vmul.f32 0.015625, %v416_v18 }
 0x432   :  { %v427_v20 = vadd.f32 1e-05, %v423_v19 }
 0x433   :  { %v420_v21 = vpop.xlane.xlu1 %419  ;;  %v418_v22 = vpop.xlane.xlu0 %417 }
 0x434   :  { %824 = vrsqrt.f32 %v427_v20  ;;  %v425_v23 = vmul.f32 0.015625, %v420_v21  ;;  %v424_v24 = vmul.f32 0.015625, %v418_v22 }
 0x436   :  { %v429_v25 = vadd.f32 1e-05, %v425_v23  ;;  %v428_v26 = vadd.f32 1e-05, %v424_v24 }
 0x437   :  { %v422_v27 = vpop.xlane.xlu1 %421 }
 0x438   :  { %826 = vrsqrt.f32 %v429_v25  ;;  %v426_v28 = vmul.f32 0.015625, %v422_v27 }
 0x439   :  { %828 = vrsqrt.f32 %v428_v26 }
 0x43a   :  { %v430_v29 = vadd.f32 1e-05, %v426_v28 }
 0x43c   :  { %830 = vrsqrt.f32 %v430_v29 }
 0x441   :  { %v825_v30 = vpop.eup %824 }
 0x442   :  { %v435_v33 = vmul.f32 %v825_v30, %v1076_v55 }
 0x444   :  { %v446_v35 = vmul.f32 %v600_v32, %v435_v33 }
 0x445   :  { %v827_v36 = vpop.eup %826 }
 0x446   :  { %v829_v37 = vpop.eup %828  ;;  %v457_v38 = vadd.f32 %v601_v34, %v446_v35  ;;  %v437_v39 = vmul.f32 %v827_v36, %v1082_v61 }
 0x447   :  { %v436_v40 = vmul.f32 %v829_v37, %v1086_v62 }
 0x448   :  { %v461_v41 = vmax.f32 %v457_v38, 0.0  ;;  %v448_v42 = vmul.f32 %v600_v32, %v437_v39 }
 0x449   :  { %v831_v43 = vpop.eup %830  ;;  %v447_v44 = vmul.f32 %v600_v32, %v436_v40 }
 0x44a   :  { %v438_v45 = vmul.f32 %v831_v43, %v1094_v2  ;;  %771 = vmatprep.mubr.f32.mxu0 %v461_v41  ;;  %v459_v46 = vadd.f32 %v601_v34, %v448_v42 }
 0x44b   :  { %v458_v47 = vadd.f32 %v601_v34, %v447_v44 }
 0x44c   :  { %v463_v48 = vmax.f32 %v459_v46, 0.0  ;;  %v449_v49 = vmul.f32 %v600_v32, %v438_v45 }
 0x44d   :  { %v462_v50 = vmax.f32 %v458_v47, 0.0 }
 0x44e   :  { %774 = vmatprep.mubr.f32.mxu1 %v463_v48  ;;  %v460_v51 = vadd.f32 %v601_v34, %v449_v49 }
 0x44f   :  { %772 = vmatmul.mubr.f32.vlgmr.msra.gmra.mxu0 %v462_v50 }
 0x450   :  { %v464_v52 = vmax.f32 %v460_v51, 0.0 }
 0x452   :  { %775 = vmatmul.mubr.f32.vlgmr.msra.gmra.mxu1 %v464_v52 }
 0x50f   :  { %v773_v54 = vpop.f32.mrf.mxu0 }
 0x510   :  { %v560_v55 = vadd.f32 %v773_v54, %v602_v53 }
 0x511   :  { %v554_v56 = vpop.f32.mrf.mxu0 }
 0x512   :  { %574 = vst [vmem:[#allocation10 + $0x8] sm:$0xff] %v560_v55  ;;  %v555_v57 = vadd.f32 %v602_v53, %v554_v56  ;;  %v776_v58 = vpop.f32.mrf.mxu1 }
 0x513   :  { %v570_v59 = vadd.f32 %v776_v58, %v602_v53 }
 0x514   :  { %573 = vst [vmem:[#allocation10] sm:$0xff] %v555_v57  ;;  %v564_v60 = vpop.f32.mrf.mxu1 }
 0x515   :  { %576 = vst [vmem:[#allocation10 + $0x18] sm:$0xff] %v570_v59  ;;  %v565_v61 = vadd.f32 %v602_v53, %v564_v60 }
 0x517   :  { %575 = vst [vmem:[#allocation10 + $0x10] sm:$0xff] %v565_v61 }
 0x518   :  { %923 = shalt.err (!%p920_p10)
}
 0x519   :  { %588 = dma.vmem_to_hbm [thread:$0]  %s583_s27, 512, %s1128_s11, [#allocation4], %s942_s22, %s942_s22, %s943_s23  }
 0x51a   :  { %938 = dma.done.wait [#allocation4], 512  }
 0x51b   :  { %939 = vsyncadd [#allocation4], 4294966784 }
 0x51c   :  { %592 = vsyncpa [#allocation3], 1 }
 0x51d   :  { %593 = vsyncpa [#allocation6], 1 }
 0x51e   :  { %594 = vsyncpa [#allocation9], 1 }
 0x51f   :  { %595 = vsyncpa [#allocation4], 1 }

</bundles_post_ra>
